<compile_context>
chip_gen: v7x
topology: tpu7x:2x2x1
jax: 0.10.0
libtpu: 0.0.40
codegen_flags: <defaults>
</compile_context>

<pallas_src>
import functools

import jax
import jax.numpy as jnp
from jax.experimental import pallas as pl
from jax.experimental.pallas import tpu as pltpu


def _round_up(x, m):
    return ((x + m - 1) // m) * m


def _pad2d(a, rows, cols, fill=0):
    r, c = a.shape
    if r == rows and c == cols:
        return a
    return jnp.pad(a, ((0, rows - r), (0, cols - c)), constant_values=fill)


# ----------------------------------------------------------------------------
# Kernel 1: fused teacher projection  o = x @ [w_out|w_hid...] + [b_out|b_hid...]
# Tiled (M, N, K) grid, f32 accumulator scratch, bias folded into acc init.
# ----------------------------------------------------------------------------
def _teacher_matmul_kernel(x_ref, w_ref, b_ref, o_ref, acc_ref):
    k = pl.program_id(2)

    @pl.when(k == 0)
    def _init():
        # Fold the bias add into the accumulator init (one sublane broadcast per
        # output tile instead of a per-K-step VPU add).
        acc_ref[...] = jnp.broadcast_to(b_ref[...], acc_ref.shape)

    acc_ref[...] += jnp.dot(x_ref[...], w_ref[...],
                            preferred_element_type=jnp.float32)

    @pl.when(k == pl.num_programs(2) - 1)
    def _store():
        o_ref[...] = acc_ref[...].astype(o_ref.dtype)


def pallas_teacher_matmul(x, w, b, *, tm_max=128, tn_max=256, tk_max=512):
    """x:(M,K) f32/bf16, w:(K,N) bf16, b:(N,) f32 -> (M,N) f32."""
    M, K = x.shape
    Kw, N = w.shape
    assert K == Kw

    tm = min(tm_max, _round_up(M, 8))
    tn = min(tn_max, _round_up(N, 128))   # multiples of 256 preferred (2x256 MXU)
    tk = min(tk_max, _round_up(K, 128))
    M_pad, N_pad, K_pad = _round_up(M, tm), _round_up(N, tn), _round_up(K, tk)

    # bf16 operands: halves HBM weight traffic, native MXU path; f32 accumulation.
    x_p = jnp.pad(x.astype(jnp.bfloat16), ((0, M_pad - M), (0, K_pad - K)))
    w_p = jnp.pad(w.astype(jnp.bfloat16), ((0, K_pad - K), (0, N_pad - N)))
    b_p = jnp.pad(b.astype(jnp.float32).reshape(1, N), ((0, 0), (0, N_pad - N)))

    grid = (M_pad // tm, N_pad // tn, K_pad // tk)
    # VMEM (double-buffered): 2*(tm*tk + tk*tn)*2B + tm*tn*4B  ~= 1.7 MiB at the
    # default tiles -> comfortably inside v7x's 64 MiB per-TC VMEM.
    out = pl.pallas_call(
        _teacher_matmul_kernel,
        out_shape=jax.ShapeDtypeStruct((M_pad, N_pad), jnp.float32),
        grid_spec=pltpu.PrefetchScalarGridSpec(
            num_scalar_prefetch=0,
            grid=grid,
            in_specs=[
                pl.BlockSpec((tm, tk), lambda i, j, k: (i, k)),
                pl.BlockSpec((tk, tn), lambda i, j, k: (k, j)),
                pl.BlockSpec((1, tn), lambda i, j, k: (0, j)),
            ],
            out_specs=pl.BlockSpec((tm, tn), lambda i, j, k: (i, j)),
            scratch_shapes=[pltpu.VMEM((tm, tn), jnp.float32)],
        ),
        compiler_params=pltpu.CompilerParams(
            dimension_semantics=("parallel", "parallel", "arbitrary")),
    )(x_p, w_p, b_p)
    return out[:M, :N]


# ----------------------------------------------------------------------------
# Kernel 2: fused loss reductions.
#   base   = CrossEntropy(student_logits, labels)                 (mean over batch)
#   dist   = KLDiv(log_softmax(s/T), log_softmax(t/T), sum, log_target) * T^2 / (B*C)
#   hidden = (1/L) * sum_l MSE(student_hidden[l], teacher_hidden[l])
#            = SSE(concat hidden) / (B * L * H)   (tiled over the feature axis)
# Output: (1, 128) lane-dense vector, lanes [0,1,2] = [base, dist, hidden].
# ----------------------------------------------------------------------------
def _fused_loss_kernel(labels_ref, s_logit_ref, t_logit_ref, s_hid_ref, t_hid_ref,
                       out_ref, acc_ref, *, tau, batch, n_classes, hidden_total):
    j = pl.program_id(0)

    @pl.when(j == 0)
    def _init():
        acc_ref[...] = jnp.zeros_like(acc_ref)

    # Per-tile hidden squared-difference partial sums (f32 vreg accumulator).
    ds = s_hid_ref[...].astype(jnp.float32) - t_hid_ref[...].astype(jnp.float32)
    row_h = jax.lax.broadcasted_iota(jnp.int32, ds.shape, 0)
    ds = jnp.where(row_h < batch, ds, 0.0)          # mask padded batch rows
    acc_ref[...] += ds * ds

    @pl.when(j == pl.num_programs(0) - 1)
    def _finalize():
        s = s_logit_ref[...].astype(jnp.float32)    # (B_pad, C) student logits
        t = t_logit_ref[...].astype(jnp.float32)    # (B_pad, C) teacher logits
        lbl = labels_ref[...]                       # (B_pad, 1) int32, -1 on pad rows

        col = jax.lax.broadcasted_iota(jnp.int32, s.shape, 1)
        row = jax.lax.broadcasted_iota(jnp.int32, s.shape, 0)
        onehot = (col == lbl).astype(jnp.float32)   # pad rows -> all-zero
        valid_row = row < batch

        # Base CE (mean reduction).  Reuse the row max for both temperatures:
        # max(s / tau) == max(s) / tau.
        m_s = jnp.max(s, axis=1, keepdims=True)
        lsm = s - m_s - jnp.log(jnp.sum(jnp.exp(s - m_s), axis=1, keepdims=True))
        base = -jnp.sum(onehot * lsm) / float(batch)

        inv_tau = 1.0 / tau
        s_t = s * inv_tau
        m_st = m_s * inv_tau
        s_log = s_t - m_st - jnp.log(jnp.sum(jnp.exp(s_t - m_st), axis=1, keepdims=True))

        t_t = t * inv_tau
        m_tt = jnp.max(t_t, axis=1, keepdims=True)
        t_log = t_t - m_tt - jnp.log(jnp.sum(jnp.exp(t_t - m_tt), axis=1, keepdims=True))

        kl_terms = jnp.exp(t_log) * (t_log - s_log)
        kl = jnp.sum(jnp.where(valid_row, kl_terms, 0.0))
        dist = kl * (tau * tau) / float(batch * n_classes)

        hidden = jnp.sum(acc_ref[...]) / hidden_total

        # Single lane-dense output vector: lanes 0/1/2 carry the three scalars.
        lane = jax.lax.broadcasted_iota(jnp.int32, out_ref.shape, 1)
        out_ref[...] = (jnp.where(lane == 0, base, 0.0)
                        + jnp.where(lane == 1, dist, 0.0)
                        + jnp.where(lane == 2, hidden, 0.0))


def pallas_distillation_losses(student_logits, teacher_logits, labels,
                               student_hidden_cat, teacher_hidden_cat, tau):
    B, C = student_logits.shape
    if student_hidden_cat is None:
        student_hidden_cat = jnp.zeros((B, 128), jnp.float32)
        teacher_hidden_cat = jnp.zeros((B, 128), jnp.float32)
    LH = student_hidden_cat.shape[1]

    B_pad = _round_up(B, 8)
    t_h = min(512, _round_up(LH, 128))
    LH_pad = _round_up(LH, t_h)
    n_steps = LH_pad // t_h

    s_logits_p = _pad2d(student_logits.astype(jnp.float32), B_pad, C)
    t_logits_p = _pad2d(teacher_logits.astype(jnp.float32), B_pad, C)
    labels_p = _pad2d(labels.astype(jnp.int32).reshape(B, 1), B_pad, 1, fill=-1)
    s_hid_p = _pad2d(student_hidden_cat.astype(jnp.float32), B_pad, LH_pad)
    t_hid_p = _pad2d(teacher_hidden_cat.astype(jnp.float32), B_pad, LH_pad)

    kernel = functools.partial(
        _fused_loss_kernel, tau=float(tau), batch=int(B),
        n_classes=int(C), hidden_total=float(B * LH))

    out = pl.pallas_call(
        kernel,
        out_shape=jax.ShapeDtypeStruct((1, 128), jnp.float32),
        grid_spec=pltpu.PrefetchScalarGridSpec(
            num_scalar_prefetch=0,
            grid=(n_steps,),
            in_specs=[
                pl.BlockSpec((B_pad, 1), lambda j: (0, 0)),     # labels (resident)
                pl.BlockSpec((B_pad, C), lambda j: (0, 0)),     # student logits
                pl.BlockSpec((B_pad, C), lambda j: (0, 0)),     # teacher logits
                pl.BlockSpec((B_pad, t_h), lambda j: (0, j)),   # student hidden tile
                pl.BlockSpec((B_pad, t_h), lambda j: (0, j)),   # teacher hidden tile
            ],
            out_specs=pl.BlockSpec((1, 128), lambda j: (0, 0)),
            scratch_shapes=[pltpu.VMEM((B_pad, t_h), jnp.float32)],
        ),
        compiler_params=pltpu.CompilerParams(
            dimension_semantics=("arbitrary",)),
    )(labels_p, s_logits_p, t_logits_p, s_hid_p, t_hid_p)
    return out[0, 0], out[0, 1], out[0, 2]


# ----------------------------------------------------------------------------
# Synthetic deterministic teacher model (fused linear: [logits | hidden_0 | ...])
# ----------------------------------------------------------------------------
def make_teacher_params(key, in_features, num_classes, hidden_dim, num_layers):
    keys = jax.random.split(key, 2 * num_layers + 2)
    scale = 1.0 / jnp.sqrt(in_features)
    w_out = jax.random.normal(keys[0], (in_features, num_classes), jnp.float32) * scale
    b_out = jax.random.normal(keys[1], (num_classes,), jnp.float32) * 0.01
    w_hid = [jax.random.normal(keys[2 + 2 * l], (in_features, hidden_dim), jnp.float32) * scale
             for l in range(num_layers)]
    b_hid = [jax.random.normal(keys[3 + 2 * l], (hidden_dim,), jnp.float32) * 0.01
             for l in range(num_layers)]
    # Fuse output head + all hidden projections along N; store weights in bf16.
    w_fused = jnp.concatenate([w_out] + w_hid, axis=1).astype(jnp.bfloat16)
    b_fused = jnp.concatenate([b_out] + b_hid, axis=0).astype(jnp.float32)
    return {
        "w": w_fused, "b": b_fused,
        "num_classes": num_classes, "hidden_dim": hidden_dim, "num_layers": num_layers,
    }


def teacher_forward(params, inputs_nchw, return_intermediate):
    # flatten NCHW -> (N, C*H*W); single fused matmul for logits + hidden states.
    x = inputs_nchw.reshape(inputs_nchw.shape[0], -1)
    full = pallas_teacher_matmul(x, params["w"], params["b"])
    full = jax.lax.stop_gradient(full)   # teacher runs under torch.no_grad() in the spec
    C = params["num_classes"]
    L = params["num_layers"]
    H = params["hidden_dim"]
    logits = full[:, :C]
    if not return_intermediate:
        return logits
    return logits, full[:, C:C + L * H]  # concatenated hidden states (B, L*H)


# ----------------------------------------------------------------------------
# DistillationLoss wrapper (mirrors the PyTorch module's forward semantics)
# ----------------------------------------------------------------------------
class DistillationLoss:
    def __init__(self, teacher_params, distillation_type, alpha, tau, gamma):
        assert distillation_type in ("none", "soft", "soft_fd")
        self.teacher_params = teacher_params
        self.distillation_type = distillation_type
        self.alpha = alpha
        self.tau = tau
        self.gamma = gamma

    def __call__(self, inputs, outputs, labels):
        student_hidden_list = None
        if self.distillation_type == "soft_fd" and isinstance(outputs, (tuple, list)):
            outputs, student_hidden_list = outputs
        outputs = outputs.astype(jnp.float32)

        if self.distillation_type == "none":
            base, _, _ = pallas_distillation_losses(
                outputs, jnp.zeros_like(outputs), labels, None, None, self.tau)
            return base

        if self.distillation_type == "soft":
            t_logits = teacher_forward(self.teacher_params, inputs,
                                       return_intermediate=False)
            base, dist, _ = pallas_distillation_losses(
                outputs, t_logits, labels, None, None, self.tau)
            return base * (1.0 - self.alpha) + dist * self.alpha

        # soft_fd
        if student_hidden_list is None:
            raise ValueError("soft_fd requires (outputs, hidden_list) from the student")
        t_logits, t_hidden_cat = teacher_forward(self.teacher_params, inputs,
                                                 return_intermediate=True)
        s_hidden_cat = jnp.concatenate(
            [h.astype(jnp.float32) for h in student_hidden_list], axis=1)
        base, dist, hidden = pallas_distillation_losses(
            outputs, t_logits, labels, s_hidden_cat, t_hidden_cat, self.tau)
        return (base * (1.0 - self.alpha)
                + dist * self.alpha
                + self.gamma * hidden)


# ----------------------------------------------------------------------------
# Pure-JAX reference (numerical sanity check; uses the same bf16 teacher weights)
# ----------------------------------------------------------------------------
def reference_loss_components(teacher_params, inputs, outputs, student_hidden_list,
                              labels, tau):
    xq = inputs.reshape(inputs.shape[0], -1).astype(jnp.bfloat16).astype(jnp.float32)
    w = teacher_params["w"].astype(jnp.float32)
    b = teacher_params["b"].astype(jnp.float32)
    full = jnp.dot(xq, w, precision=jax.lax.Precision.HIGHEST) + b
    C = teacher_params["num_classes"]
    H = teacher_params["hidden_dim"]
    t_logits = full[:, :C]

    lsm = jax.nn.log_softmax(outputs, axis=1)
    onehot = jax.nn.one_hot(labels, C, dtype=jnp.float32)
    base = -jnp.mean(jnp.sum(onehot * lsm, axis=1))

    s_log = jax.nn.log_softmax(outputs / tau, axis=1)
    t_log = jax.nn.log_softmax(t_logits / tau, axis=1)
    dist = jnp.sum(jnp.exp(t_log) * (t_log - s_log)) * (tau * tau) / outputs.size

    hidden = jnp.float32(0.0)
    if student_hidden_list is not None:
        L = len(student_hidden_list)
        for l, sh in enumerate(student_hidden_list):
            th = full[:, C + l * H: C + (l + 1) * H]
            hidden = hidden + jnp.mean((sh - th) ** 2)
        hidden = hidden / L
    return base, dist, hidden


if __name__ == "__main__":
    key = jax.random.PRNGKey(0)
    kx, ks, kh1, kh2, kl, kt = jax.random.split(key, 6)

    # small shapes
    B, C, H, W = 2, 4, 16, 16          # image inputs (NCHW)
    num_classes = 32
    hidden_dim = 64
    num_layers = 2
    alpha, tau, gamma = 0.5, 2.0, 1.0

    inputs = jax.random.normal(kx, (B, C, H, W), jnp.float32)
    student_logits = jax.random.normal(ks, (B, num_classes), jnp.float32)
    student_hidden = [
        jax.random.normal(kh1, (B, hidden_dim), jnp.float32),
        jax.random.normal(kh2, (B, hidden_dim), jnp.float32),
    ]
    labels = jax.random.randint(kl, (B,), 0, num_classes)

    teacher_params = make_teacher_params(kt, C * H * W, num_classes, hidden_dim, num_layers)

    # soft_fd
    crit_fd = DistillationLoss(teacher_params, "soft_fd", alpha, tau, gamma)
    loss_fd = jax.block_until_ready(crit_fd(inputs, (student_logits, student_hidden), labels))

    # soft
    crit_soft = DistillationLoss(teacher_params, "soft", alpha, tau, gamma)
    loss_soft = jax.block_until_ready(crit_soft(inputs, student_logits, labels))

    # none
    crit_none = DistillationLoss(teacher_params, "none", alpha, tau, gamma)
    loss_none = jax.block_until_ready(crit_none(inputs, student_logits, labels))

    ref_base, ref_dist, ref_hidden = reference_loss_components(
        teacher_params, inputs, student_logits, student_hidden, labels, tau)
    ref_fd = ref_base * (1 - alpha) + ref_dist * alpha + gamma * ref_hidden
    ref_soft = ref_base * (1 - alpha) + ref_dist * alpha

    assert jnp.allclose(loss_fd, ref_fd, rtol=1e-3, atol=1e-3), (loss_fd, ref_fd)
    assert jnp.allclose(loss_soft, ref_soft, rtol=1e-3, atol=1e-3), (loss_soft, ref_soft)
    assert jnp.allclose(loss_none, ref_base, rtol=1e-3, atol=1e-3), (loss_none, ref_base)

    print("KERNEL_OK")
</pallas_src>

<mosaic_0001>
module attributes {stable_mosaic.version = 11 : i64} {
  func.func @_teacher_matmul_kernel(%arg0: i32, %arg1: i32, %arg2: i32, %arg3: memref<8x512xbf16, #tpu.memory_space<vmem>>, %arg4: memref<512x256xbf16, #tpu.memory_space<vmem>>, %arg5: memref<1x256xf32, #tpu.memory_space<vmem>>, %arg6: memref<8x256xf32, #tpu.memory_space<vmem>>, %arg7: memref<8x256xf32, #tpu.memory_space<vmem>>) attributes {dimension_semantics = [#tpu.dimension_semantics<parallel>, #tpu.dimension_semantics<parallel>, #tpu.dimension_semantics<arbitrary>], iteration_bounds = array<i64: 1, 1, 2>, scalar_prefetch = 0 : i64, scratch_operands = 1 : i64, tpu.core_type = #tpu.core_type<tc>, window_params = [{transform_indices = @transform_0, window_bounds = array<i64: 8, 512>}, {transform_indices = @transform_1, window_bounds = array<i64: 512, 256>}, {transform_indices = @transform_2, window_bounds = array<i64: 1, 256>}, {transform_indices = @transform_3, window_bounds = array<i64: 8, 256>}]} {
    %c0_i32 = arith.constant 0 : i32
    %0 = arith.cmpi eq, %arg2, %c0_i32 : i32
    %1 = arith.extui %0 : i1 to i32
    %c0_i32_0 = arith.constant 0 : i32
    %2 = arith.cmpi ne, %1, %c0_i32_0 : i32
    scf.if %2 {
      %c0_9 = arith.constant 0 : index
      %c0_10 = arith.constant 0 : index
      %12 = vector.load %arg5[%c0_9, %c0_10] : memref<1x256xf32, #tpu.memory_space<vmem>>, vector<1x256xf32>
      %13 = vector.shape_cast %12 : vector<1x256xf32> to vector<1x256xf32>
      %14 = vector.broadcast %13 : vector<1x256xf32> to vector<8x256xf32>
      %c0_11 = arith.constant 0 : index
      %c0_12 = arith.constant 0 : index
      %15 = vector.load %arg7[%c0_11, %c0_12] : memref<8x256xf32, #tpu.memory_space<vmem>>, vector<8x256xf32>
      tpu.vector_store %arg7[%c0_11, %c0_12], %14 {strides = array<i32>} : memref<8x256xf32, #tpu.memory_space<vmem>>, vector<8x256xf32>,
    } else {
    }
    %c0 = arith.constant 0 : index
    %c0_1 = arith.constant 0 : index
    %3 = vector.load %arg7[%c0, %c0_1] : memref<8x256xf32, #tpu.memory_space<vmem>>, vector<8x256xf32>
    %c0_2 = arith.constant 0 : index
    %c0_3 = arith.constant 0 : index
    %4 = vector.load %arg3[%c0_2, %c0_3] : memref<8x512xbf16, #tpu.memory_space<vmem>>, vector<8x512xbf16>
    %c0_4 = arith.constant 0 : index
    %c0_5 = arith.constant 0 : index
    %5 = vector.load %arg4[%c0_4, %c0_5] : memref<512x256xbf16, #tpu.memory_space<vmem>>, vector<512x256xbf16>
    %cst = arith.constant dense<0.000000e+00> : vector<8x256xf32>
    %6 = tpu.matmul %4, %5, %cst {dimension_numbers = #tpu.dot_dimension_numbers<[1], [0], [0], [1], [0, 0, 1, 1], [], []>} : vector<8x512xbf16>, vector<512x256xbf16>, vector<8x256xf32> -> vector<8x256xf32>
    %7 = arith.addf %3, %6 : vector<8x256xf32>
    %c0_6 = arith.constant 0 : index
    %c0_7 = arith.constant 0 : index
    %8 = vector.load %arg7[%c0_6, %c0_7] : memref<8x256xf32, #tpu.memory_space<vmem>>, vector<8x256xf32>
    tpu.vector_store %arg7[%c0_6, %c0_7], %7 {strides = array<i32>} : memref<8x256xf32, #tpu.memory_space<vmem>>, vector<8x256xf32>,
    %c1_i32 = arith.constant 1 : i32
    %9 = arith.cmpi eq, %arg2, %c1_i32 : i32
    %10 = arith.extui %9 : i1 to i32
    %c0_i32_8 = arith.constant 0 : i32
    %11 = arith.cmpi ne, %10, %c0_i32_8 : i32
    scf.if %11 {
      %c0_9 = arith.constant 0 : index
      %c0_10 = arith.constant 0 : index
      %12 = vector.load %arg7[%c0_9, %c0_10] : memref<8x256xf32, #tpu.memory_space<vmem>>, vector<8x256xf32>
      %c0_11 = arith.constant 0 : index
      %c0_12 = arith.constant 0 : index
      %13 = vector.load %arg6[%c0_11, %c0_12] : memref<8x256xf32, #tpu.memory_space<vmem>>, vector<8x256xf32>
      tpu.vector_store %arg6[%c0_11, %c0_12], %12 {strides = array<i32>} : memref<8x256xf32, #tpu.memory_space<vmem>>, vector<8x256xf32>,
    } else {
    }
    return
  }
  func.func @transform_0(%arg0: i32, %arg1: i32, %arg2: i32) -> (i32, i32) {
    %c0_i32 = arith.constant 0 : i32
    return %arg0, %arg2 : i32, i32
  }
  func.func @transform_1(%arg0: i32, %arg1: i32, %arg2: i32) -> (i32, i32) {
    %c0_i32 = arith.constant 0 : i32
    return %arg2, %arg1 : i32, i32
  }
  func.func @transform_2(%arg0: i32, %arg1: i32, %arg2: i32) -> (i32, i32) {
    %c0_i32 = arith.constant 0 : i32
    %c0_i32_0 = arith.constant 0 : i32
    return %c0_i32, %arg1 : i32, i32
  }
  func.func @transform_3(%arg0: i32, %arg1: i32, %arg2: i32) -> (i32, i32) {
    %c0_i32 = arith.constant 0 : i32
    return %arg0, %arg1 : i32, i32
  }
}

</mosaic_0001>

<bundles_post_ra>
// kernel: tpu_custom_call.1
= control target key start
LH: loop header
LB: loop body
LE: loop exit
PB: predicated region body
PF: predicated region fallthrough
CT: control target
= control target key end

     0   :  { %8 = vsyncpa [#allocation4], 0  ;;  %s1612_s0 = inlined_call_operand.hbm [shape: bf16[8,1024], index: 0, kind: input, shape index: {}]   ;;  %s1613_s1 = inlined_call_operand.hbm [shape: bf16[1024,256], index: 1, kind: input, shape index: {}]   ;;  %s1614_s2 = inlined_call_operand.vmem [shape: f32[1,256], index: 2, kind: input, shape index: {}]   ;;  %s1615_s3 = inlined_call_operand.hbm [shape: f32[8,256], index: 3, kind: output, shape index: {}]  }
   0x1   :  { %10 = vsyncpa [#allocation4 + $0x1], 0 }
   0x2   :  { %11 = vsyncpa [#allocation7], 0 }
   0x3   :  { %13 = vsyncpa [#allocation7 + $0x1], 0 }
   0x4   :  { %14 = vsyncpa [#allocation5], 0  ;;  %s1338_s12 = smov 0   ;;  %s1340_s13 = smov 0  }
   0x5   :  { %s1342_s14 = smov 0   ;;  %s1344_s15 = smov 0  }
   0x6   :  { %s1346_s16 = smov 0   ;;  %s1348_s17 = smov 0  }
   0x7 LB: > { %s907_s18 = sadd.s32 4294967295, %s1311_s17   ;;  %s32_s19 = sadd.s32 1, %s1307_s16  ;;  %s1311_s17 = sphi %s1348_s17, %s20_s17   ;;  %s1307_s16 = sphi %s1346_s16, %s1629_s16   ;;  %s1303_s15 = sphi %s1344_s15, %s1628_s15   ;;  %s1299_s14 = sphi %s1342_s14, %s1627_s14   ;;  %s1295_s13 = sphi %s1340_s13, %s1626_s13   ;;  %s1291_s12 = sphi %s1338_s12, %s1625_s12  }
   0x8   : > { %p33_p0 = scmp.ge.s32.totalorder %s32_s19, 2  ;;  %s48_s20 = sadd.s32 1, %s1299_s14 }
   0x9   : > { %p55_p1 = scmp.ne.s32.totalorder %s1299_s14, %s1295_s13  ;;  %p56_p2 = scmp.eq.s32.totalorder %s1311_s17, 0 }
   0xa   : > { %s1631_s19 = smov (%p33_p0, %s32_s19), 0  ;;  %p61_p4 = scmp.ne.s32.totalorder %s1295_s13, %s1291_s12 }
   0xb   : > { %p1374_p3 = por %p56_p2, %p55_p1  ;;  %s44_s22 = ssub.s32 %s1307_s16, %s1631_s19 }
   0xc   : > { %p62_p5 = scmp.eq.s32.totalorder %s907_s18, 0  ;;  %p46_p6 = scmp.eq.s32.totalorder %s44_s22, 0 }
   0xd   : > { %p1013_p8 = scmp.lt.s32.totalorder %s1311_s17, 2  ;;  %s1392_s25 = sand.u32 1, %s1299_s14  }
   0xe   : > { %p1383_p7 = por %p62_p5, %p61_p4  ;;  %s995_s26 = sshll.u32 %s1307_s16, 8 }
   0xf   : > { %s1389_s24 = scalar_select %p46_p6, %s1299_s14, %s48_s20  }
  0x10   : > { %s1618_s23 = scalar_select %p1383_p7, 1, 0 }
  0x11   : > { %s911_s27 = sshll.u32 %s1392_s25, 4  ;;  %s1399_s30 = scalar_lea.hbm %s1612_s0, %s995_s26 }
  0x12   : > { %s179_s4 = scalar_lea.vmem [#allocation3], %s911_s27  ;;  %p1403_p9 = pnand %p1013_p8, %p1374_p3 }
  0x13   : > { %s189_s5 = sshll.u32 %s179_s4, 4  ;;  %s176_s7 = scalar_lea.sflag [#allocation4], %s1392_s25  ;;  %s1407_s5 = int_to_ptr.vmem [resolvable:$true] %s189_s5 }
  0x14   : > { %s1167_s8 = scalar_lea.hbm %s1399_s30, 256  ;;  %p1169_p13 = pneg %p1403_p9 }
  0x15   : > { %p1168_p12 = scmp.ne.s32.totalorder %s1399_s30, %s1167_s8  ;;  %s1172_s11 = scalar_lea.hbm %s1612_s0, 512 }
  0x16   : > { %p1173_p2 = scmp.lt.u32.totalorder %s1399_s30, %s1612_s0  ;;  %p1174_p3 = scmp.lt.u32.totalorder %s1172_s11, %s1167_s8 }
  0x17   : > { %p1170_p0 = pnand %p1169_p13, %p1168_p12  ;;  %p1176_p5 = scmp.lt.u32.totalorder %s1167_s8, %s1399_s30 }
  0x18   : > { %p1175_p4 = por %p1174_p3, %p1173_p2 }
  0x19   : > { %p1171_p1 = pneg %p1170_p0 }
  0x1a   : > { %p1177_p6 = por %p1176_p5, %p1175_p4 }
  0x1c   : > { %p1178_p8 = pnand %p1177_p6, %p1171_p1 }
  0x1e   : > { %1181 = shalt.err (!%p1178_p8)
}
  0x1f   : > { %s1182_s21 = scalar_lea.vmem %s1407_s5, 256  ;;  %s1313_s22 = smov [#allocation3]  }
  0x20   : > { %p1183_p12 = scmp.ne.s32.totalorder %s1407_s5, %s1182_s21  ;;  %s1187_s26 = sshll.u32 %s1313_s22, 4  ;;  %s1188_s26 = int_to_ptr.vmem [resolvable:$false] %s1187_s26 }
  0x21   : > { %s1189_s27 = scalar_lea.vmem %s1188_s26, 512  ;;  %p1190_p11 = scmp.lt.s32.totalorder %s1407_s5, %s1188_s26 }
  0x22   : > { %p1185_p0 = pnand %p1183_p12, %p1169_p13  ;;  %p1191_p2 = scmp.lt.s32.totalorder %s1189_s27, %s1182_s21 }
  0x24   : > { %p1186_p10 = pneg %p1185_p0  ;;  %p1192_p3 = por %p1191_p2, %p1190_p11 }
  0x26   : > { %p1193_p4 = pnand %p1192_p3, %p1186_p10 }
  0x28   : > { %1196 = shalt.err (!%p1193_p4)
}
  0x29   : > { %1009 = dma.hbm_to_vmem [thread:$0]  (!%p1403_p9), %s1399_s30, 256, %s1407_s5, %s176_s7  }
  0x2a   : > { %p1620_p1 = scmp.lt.s32.totalorder %s1311_s17, 3  ;;  %p1621_p5 = scmp.ge.s32.totalorder %s1311_s17, 1 }
  0x2b   : > { %s914_s29 = sshll.u32 %s1392_s25, 9  ;;  %s997_s4 = sshll.u32 %s1307_s16, 13 }
  0x2c   : > { %p1441_p6 = pnand %p1621_p5, %p1620_p1  ;;  %s1450_s10 = scalar_lea.hbm %s1613_s1, %s997_s4 }
  0x2d   : > { %s200_s11 = scalar_lea.vmem [#allocation6], %s914_s29  ;;  %s197_s30 = scalar_lea.sflag [#allocation7], %s1392_s25 }
  0x2e   : > { %s210_s12 = sshll.u32 %s200_s11, 4  ;;  %s1197_s5 = scalar_lea.hbm %s1450_s10, 8192  ;;  %s1452_s12 = int_to_ptr.vmem [resolvable:$true] %s210_s12 }
  0x2f   : > { %p1198_p10 = scmp.ne.s32.totalorder %s1450_s10, %s1197_s5  ;;  %s1202_s21 = scalar_lea.hbm %s1613_s1, 16384 }
  0x30   : > { %p1203_p12 = scmp.lt.u32.totalorder %s1450_s10, %s1613_s1  ;;  %p1204_p0 = scmp.lt.u32.totalorder %s1202_s21, %s1197_s5 }
  0x31   : > { %p1200_p11 = pnand %p1198_p10, %p1169_p13  ;;  %p1206_p3 = scmp.lt.u32.totalorder %s1197_s5, %s1450_s10 }
  0x32   : > { %p1205_p2 = por %p1204_p0, %p1203_p12 }
  0x33   : > { %p1201_p8 = pneg %p1200_p11 }
  0x34   : > { %p1207_p4 = por %p1206_p3, %p1205_p2 }
  0x36   : > { %p1208_p1 = pnand %p1207_p4, %p1201_p8 }
  0x38   : > { %1211 = shalt.err (!%p1208_p1)
}
  0x39   : > { %s1212_s27 = scalar_lea.vmem %s1452_s12, 8192  ;;  %s1314_s29 = smov [#allocation6]  }
  0x3a   : > { %p1213_p5 = scmp.ne.s32.totalorder %s1452_s12, %s1212_s27  ;;  %s1217_s4 = sshll.u32 %s1314_s29, 4  ;;  %s1218_s4 = int_to_ptr.vmem [resolvable:$false] %s1217_s4 }
  0x3b   : > { %s1219_s8 = scalar_lea.vmem %s1218_s4, 16384  ;;  %p1220_p7 = scmp.lt.s32.totalorder %s1452_s12, %s1218_s4 }
  0x3c   : > { %p1215_p10 = pnand %p1213_p5, %p1169_p13  ;;  %p1221_p12 = scmp.lt.s32.totalorder %s1219_s8, %s1212_s27 }
  0x3e   : > { %p1216_p11 = pneg %p1215_p10  ;;  %p1222_p0 = por %p1221_p12, %p1220_p7 }
  0x40   : > { %p1223_p2 = pnand %p1222_p0, %p1216_p11 }
  0x42   : > { %1226 = shalt.err (!%p1223_p2)
}
  0x43   : > { %s1315_s9 = smov 128   ;;  %s1316_s11 = smov 8  }
  0x44   : > { %1012 = dma.hbm_to_vmem [thread:$0]  (!%p1403_p9), %s1450_s10, 8192, %s1452_s12, %s197_s30, %s1315_s9, %s1315_s9, %s1316_s11  }
  0x45   : > { %222 = sbr.rel (%p1441_p6) target bundleno = 407 (0x197), region = 32  ;;  %s224_s5 = sand.u32 (!%p1441_p6), 1, %s1295_s13  }
  0x46   : > { %s919_s7 = sshll.u32 (!%p1441_p6), %s224_s5, 4  ;;  %s225_s20 = scalar_lea.sflag (!%p1441_p6), [#allocation4], %s224_s5 }
  0x47   : > { %s1483_s21 = scalar_lea.vmem (!%p1441_p6), [#allocation3], %s919_s7  ;;  %p1623_p7 = scmp.ne.s32.totalorder (!%p1441_p6), %s1618_s23, 0 }
  0x4c   : > { %1278 = dma.done.wait (%p1623_p7), %s225_s20, 256  }
  0x4d   : > { %1280 = vsyncadd (%p1623_p7), %s225_s20, 4294967040  ;;  %s920_s22 = sshll.u32 %s224_s5, 9  ;;  %s234_s6 = scalar_lea.sflag [#allocation7], %s224_s5 }
  0x4e   : > { %s1489_s25 = scalar_lea.vmem [#allocation6], %s920_s22 }
  0x4f   : > { %1282 = dma.done.wait (%p1623_p7), %s234_s6, 8192  }
  0x50   : > { %1284 = vsyncadd (%p1623_p7), %s234_s6, 4294959104  ;;  %p921_p9 = scmp.ne.s32.totalorder %s1303_s15, 0 }
  0x51   : > { %v279_v0 = vlaneseq (!%p921_p9)  ;;  %v277_v2 = vld [vmem:[%s1614_s2] sm:$0x3] (!%p921_p9) }
  0x52   : > { %276 = sbr.rel (%p921_p9) target bundleno = 90 (0x5a), region = 44 }
  0x53   : > { %v280_v1 = vshrl.u32 (!%p921_p9), %v279_v0, 7 }
  0x55   : > { %v281_v3 = vsub.s32 (!%p921_p9), 0, %v280_v1  ;;  %v285_v4 = vsub.s32 (!%p921_p9), 1, %v280_v1 }
  0x57   : > { %v282_v5 = vrot.slane (!%p921_p9), %v277_v2, %v281_v3  ;;  %v286_v6 = vrot.slane (!%p921_p9), %v277_v2, %v285_v4 }
  0x59   : > { %289 = vst [vmem:[#allocation2] sm:$0xff] %v282_v5  ;;  %290 = vst [vmem:[#allocation2 + $0x8] sm:$0xff] %v286_v6 }
  0x5a PF: > { %v1067_v7 = vld [vmem:[%s1489_s25 + $0x4] ss:$8 sps:$4 sm:$0xff]   ;;  %v1071_v9 = vld [vmem:[%s1489_s25] ss:$8 sps:$4 sm:$0xff]   ;;  %v1073_v11 = vld [vmem:[%s1489_s25 + $0x14] ss:$8 sps:$4 sm:$0xff]  }
  0x5b   : > { %v1069_v8 = vld [vmem:[%s1489_s25 + $0x104] ss:$8 sps:$4 sm:$0xff]   ;;  %693 = vmatprep.subr.bf16.mxu0 %v1067_v7  ;;  %v1072_v10 = vld [vmem:[%s1489_s25 + $0x100] ss:$8 sps:$4 sm:$0xff]   ;;  %v1075_v12 = vld [vmem:[%s1489_s25 + $0x114] ss:$8 sps:$4 sm:$0xff]  }
  0x5c   : > { %734 = vmatprep.subr.bf16.mxu1 %v1069_v8  ;;  %694 = vmatpush1.bf16.msra.mxu0 %v1071_v9  ;;  %v1077_v13 = vld [vmem:[%s1489_s25 + $0x10] ss:$8 sps:$4 sm:$0xff]   ;;  %v1079_v15 = vld [vmem:[%s1489_s25 + $0x24] ss:$8 sps:$4 sm:$0xff]   ;;  %v1083_v17 = vld [vmem:[%s1489_s25 + $0x20] ss:$8 sps:$4 sm:$0xff]  }
  0x5d   : > { %735 = vmatpush1.bf16.msra.mxu1 %v1072_v10  ;;  %695 = vmatprep.subr.bf16.mxu0 %v1073_v11  ;;  %v1078_v14 = vld [vmem:[%s1489_s25 + $0x110] ss:$8 sps:$4 sm:$0xff]   ;;  %v1081_v16 = vld [vmem:[%s1489_s25 + $0x124] ss:$8 sps:$4 sm:$0xff]   ;;  %v1084_v18 = vld [vmem:[%s1489_s25 + $0x120] ss:$8 sps:$4 sm:$0xff]  }
  0x5e   : > { %736 = vmatprep.subr.bf16.mxu1 %v1075_v12  ;;  %v1085_v19 = vld [vmem:[%s1489_s25 + $0x34] ss:$8 sps:$4 sm:$0xff]   ;;  %v1089_v21 = vld [vmem:[%s1489_s25 + $0x30] ss:$8 sps:$4 sm:$0xff]   ;;  %v1091_v23 = vld [vmem:[%s1489_s25 + $0x44] ss:$8 sps:$4 sm:$0xff]  }
  0x5f   : > { %v1087_v20 = vld [vmem:[%s1489_s25 + $0x134] ss:$8 sps:$4 sm:$0xff]   ;;  %v1090_v22 = vld [vmem:[%s1489_s25 + $0x130] ss:$8 sps:$4 sm:$0xff]   ;;  %v1093_v24 = vld [vmem:[%s1489_s25 + $0x144] ss:$8 sps:$4 sm:$0xff]  }
  0x60   : > { %696 = vmatpush1.bf16.msra.mxu0 %v1077_v13  ;;  %v1095_v25 = vld [vmem:[%s1489_s25 + $0x40] ss:$8 sps:$4 sm:$0xff]   ;;  %v1097_v27 = vld [vmem:[%s1489_s25 + $0x54] ss:$8 sps:$4 sm:$0xff]   ;;  %v1101_v29 = vld [vmem:[%s1489_s25 + $0x50] ss:$8 sps:$4 sm:$0xff]  }
  0x61   : > { %737 = vmatpush1.bf16.msra.mxu1 %v1078_v14  ;;  %697 = vmatprep.subr.bf16.mxu0 %v1079_v15  ;;  %v1096_v26 = vld [vmem:[%s1489_s25 + $0x140] ss:$8 sps:$4 sm:$0xff]   ;;  %v1099_v28 = vld [vmem:[%s1489_s25 + $0x154] ss:$8 sps:$4 sm:$0xff]   ;;  %v1102_v30 = vld [vmem:[%s1489_s25 + $0x150] ss:$8 sps:$4 sm:$0xff]  }
  0x62   : > { %738 = vmatprep.subr.bf16.mxu1 %v1081_v16  ;;  %v1103_v31 = vld [vmem:[%s1489_s25 + $0x64] ss:$8 sps:$4 sm:$0xff]   ;;  %v1107_v33 = vld [vmem:[%s1489_s25 + $0x60] ss:$8 sps:$4 sm:$0xff]   ;;  %v1109_v35 = vld [vmem:[%s1489_s25 + $0x74] ss:$8 sps:$4 sm:$0xff]  }
  0x63   : > { %v1105_v32 = vld [vmem:[%s1489_s25 + $0x164] ss:$8 sps:$4 sm:$0xff]   ;;  %v1108_v34 = vld [vmem:[%s1489_s25 + $0x160] ss:$8 sps:$4 sm:$0xff]   ;;  %v1111_v36 = vld [vmem:[%s1489_s25 + $0x174] ss:$8 sps:$4 sm:$0xff]  }
  0x64   : > { %698 = vmatpush1.bf16.msra.mxu0 %v1083_v17  ;;  %v1113_v37 = vld [vmem:[%s1489_s25 + $0x70] ss:$8 sps:$4 sm:$0xff]   ;;  %v1115_v39 = vld [vmem:[%s1489_s25 + $0x84] ss:$8 sps:$4 sm:$0xff]   ;;  %v1119_v41 = vld [vmem:[%s1489_s25 + $0x80] ss:$8 sps:$4 sm:$0xff]  }
  0x65   : > { %739 = vmatpush1.bf16.msra.mxu1 %v1084_v18  ;;  %699 = vmatprep.subr.bf16.mxu0 %v1085_v19  ;;  %v1114_v38 = vld [vmem:[%s1489_s25 + $0x170] ss:$8 sps:$4 sm:$0xff]   ;;  %v1117_v40 = vld [vmem:[%s1489_s25 + $0x184] ss:$8 sps:$4 sm:$0xff]   ;;  %v1120_v42 = vld [vmem:[%s1489_s25 + $0x180] ss:$8 sps:$4 sm:$0xff]  }
  0x66   : > { %740 = vmatprep.subr.bf16.mxu1 %v1087_v20  ;;  %v1121_v43 = vld [vmem:[%s1489_s25 + $0x94] ss:$8 sps:$4 sm:$0xff]   ;;  %v1125_v45 = vld [vmem:[%s1489_s25 + $0x90] ss:$8 sps:$4 sm:$0xff]   ;;  %v1127_v47 = vld [vmem:[%s1489_s25 + $0xa4] ss:$8 sps:$4 sm:$0xff]  }
  0x67   : > { %v1123_v44 = vld [vmem:[%s1489_s25 + $0x194] ss:$8 sps:$4 sm:$0xff]   ;;  %v1126_v46 = vld [vmem:[%s1489_s25 + $0x190] ss:$8 sps:$4 sm:$0xff]   ;;  %v1129_v48 = vld [vmem:[%s1489_s25 + $0x1a4] ss:$8 sps:$4 sm:$0xff]  }
  0x68   : > { %700 = vmatpush1.bf16.msra.mxu0 %v1089_v21  ;;  %v1131_v49 = vld [vmem:[%s1489_s25 + $0xa0] ss:$8 sps:$4 sm:$0xff]   ;;  %v1133_v51 = vld [vmem:[%s1489_s25 + $0xb4] ss:$8 sps:$4 sm:$0xff]   ;;  %v1137_v56 = vld [vmem:[%s1489_s25 + $0xb0] ss:$8 sps:$4 sm:$0xff]  }
  0x69   : > { %741 = vmatpush1.bf16.msra.mxu1 %v1090_v22  ;;  %701 = vmatprep.subr.bf16.mxu0 %v1091_v23  ;;  %v1132_v50 = vld [vmem:[%s1489_s25 + $0x1a0] ss:$8 sps:$4 sm:$0xff]   ;;  %v1135_v52 = vld [vmem:[%s1489_s25 + $0x1b4] ss:$8 sps:$4 sm:$0xff]   ;;  %v1138_v57 = vld [vmem:[%s1489_s25 + $0x1b0] ss:$8 sps:$4 sm:$0xff]  }
  0x6a   : > { %742 = vmatprep.subr.bf16.mxu1 %v1093_v24  ;;  %v293_v53 = vld [vmem:[%s1483_s21] sm:$0xff]  ;;  %v294_v55 = vld [vmem:[%s1483_s21 + $0x8] sm:$0xff]  ;;  %p990_p13 = scmp.ne.s32.totalorder %s1303_s15, 1 }
  0x6b   : > { %v923_v54 = vcombine.high %v293_v53, %v293_v53  ;;  %v925_v58 = vcombine.high %v294_v55, %v294_v55  ;;  %v1139_v59 = vld [vmem:[%s1489_s25 + $0xc4] ss:$8 sps:$4 sm:$0xff]   ;;  %v1143_v61 = vld [vmem:[%s1489_s25 + $0xc0] ss:$8 sps:$4 sm:$0xff]   ;;  %v1145_v63 = vld [vmem:[%s1489_s25 + $0xd4] ss:$8 sps:$4 sm:$0xff]   ;;  %v922_v11 = vcombine.low %v293_v53, %v293_v53  ;;  %v924_v12 = vcombine.low %v294_v55, %v294_v55 }
  0x6c   : > { %702 = vmatpush1.bf16.msra.mxu0 %v1095_v25  ;;  %v1141_v60 = vld [vmem:[%s1489_s25 + $0x1c4] ss:$8 sps:$4 sm:$0xff]   ;;  %v1144_v62 = vld [vmem:[%s1489_s25 + $0x1c0] ss:$8 sps:$4 sm:$0xff]   ;;  %v1147_v0 = vld [vmem:[%s1489_s25 + $0x1d4] ss:$8 sps:$4 sm:$0xff]  }
  0x6d   : > { %743 = vmatpush1.bf16.msra.mxu1 %v1096_v26  ;;  %703 = vmatprep.subr.bf16.mxu0 %v1097_v27  ;;  %v1149_v1 = vld [vmem:[%s1489_s25 + $0xd0] ss:$8 sps:$4 sm:$0xff]   ;;  %v1151_v3 = vld [vmem:[%s1489_s25 + $0xe4] ss:$8 sps:$4 sm:$0xff]   ;;  %v1155_v5 = vld [vmem:[%s1489_s25 + $0xe0] ss:$8 sps:$4 sm:$0xff]  }
  0x6e   : > { %744 = vmatprep.subr.bf16.mxu1 %v1099_v28  ;;  %725 = vmatprep.mubr.bf16.mxu0 %v923_v54  ;;  %v1150_v2 = vld [vmem:[%s1489_s25 + $0x1d0] ss:$8 sps:$4 sm:$0xff]   ;;  %v1153_v4 = vld [vmem:[%s1489_s25 + $0x1e4] ss:$8 sps:$4 sm:$0xff]   ;;  %v1156_v6 = vld [vmem:[%s1489_s25 + $0x1e0] ss:$8 sps:$4 sm:$0xff]  }
  0x6f   : > { %766 = vmatprep.mubr.bf16.mxu1 %v925_v58  ;;  %v1157_v7 = vld [vmem:[%s1489_s25 + $0xf4] ss:$8 sps:$4 sm:$0xff]   ;;  %v1161_v9 = vld [vmem:[%s1489_s25 + $0xf0] ss:$8 sps:$4 sm:$0xff]  }
  0x70   : > { %704 = vmatpush1.bf16.msra.mxu0 %v1101_v29  ;;  %v1159_v8 = vld [vmem:[%s1489_s25 + $0x1f4] ss:$8 sps:$4 sm:$0xff]   ;;  %v1162_v10 = vld [vmem:[%s1489_s25 + $0x1f0] ss:$8 sps:$4 sm:$0xff]  }
  0x71   : > { %745 = vmatpush1.bf16.msra.mxu1 %v1102_v30  ;;  %705 = vmatprep.subr.bf16.mxu0 %v1103_v31  ;;  %v291_v14 = vld [vmem:[#allocation2] sm:$0xff]  ;;  %v292_v18 = vld [vmem:[#allocation2 + $0x8] sm:$0xff] }
  0x72   : > { %746 = vmatprep.subr.bf16.mxu1 %v1105_v32 }
  0x74   : > { %706 = vmatpush1.bf16.msra.mxu0 %v1107_v33 }
  0x75   : > { %747 = vmatpush1.bf16.msra.mxu1 %v1108_v34  ;;  %707 = vmatprep.subr.bf16.mxu0 %v1109_v35 }
  0x76   : > { %748 = vmatprep.subr.bf16.mxu1 %v1111_v36 }
  0x78   : > { %708 = vmatpush1.bf16.msra.mxu0 %v1113_v37 }
  0x79   : > { %749 = vmatpush1.bf16.msra.mxu1 %v1114_v38  ;;  %709 = vmatprep.subr.bf16.mxu0 %v1115_v39 }
  0x7a   : > { %750 = vmatprep.subr.bf16.mxu1 %v1117_v40 }
  0x7c   : > { %710 = vmatpush1.bf16.msra.mxu0 %v1119_v41 }
  0x7d   : > { %751 = vmatpush1.bf16.msra.mxu1 %v1120_v42  ;;  %711 = vmatprep.subr.bf16.mxu0 %v1121_v43 }
  0x7e   : > { %752 = vmatprep.subr.bf16.mxu1 %v1123_v44 }
  0x80   : > { %712 = vmatpush1.bf16.msra.mxu0 %v1125_v45 }
  0x81   : > { %753 = vmatpush1.bf16.msra.mxu1 %v1126_v46  ;;  %713 = vmatprep.subr.bf16.mxu0 %v1127_v47 }
  0x82   : > { %754 = vmatprep.subr.bf16.mxu1 %v1129_v48 }
  0x84   : > { %714 = vmatpush1.bf16.msra.mxu0 %v1131_v49 }
  0x85   : > { %755 = vmatpush1.bf16.msra.mxu1 %v1132_v50  ;;  %715 = vmatprep.subr.bf16.mxu0 %v1133_v51 }
  0x86   : > { %756 = vmatprep.subr.bf16.mxu1 %v1135_v52 }
  0x88   : > { %716 = vmatpush1.bf16.msra.mxu0 %v1137_v56 }
  0x89   : > { %757 = vmatpush1.bf16.msra.mxu1 %v1138_v57  ;;  %717 = vmatprep.subr.bf16.mxu0 %v1139_v59 }
  0x8a   : > { %758 = vmatprep.subr.bf16.mxu1 %v1141_v60 }
  0x8c   : > { %718 = vmatpush1.bf16.msra.mxu0 %v1143_v61 }
  0x8d   : > { %759 = vmatpush1.bf16.msra.mxu1 %v1144_v62  ;;  %719 = vmatprep.subr.bf16.mxu0 %v1145_v63 }
  0x8e   : > { %760 = vmatprep.subr.bf16.mxu1 %v1147_v0 }
  0x90   : > { %720 = vmatpush1.bf16.msra.mxu0 %v1149_v1 }
  0x91   : > { %761 = vmatpush1.bf16.msra.mxu1 %v1150_v2  ;;  %721 = vmatprep.subr.bf16.mxu0 %v1151_v3 }
  0x92   : > { %762 = vmatprep.subr.bf16.mxu1 %v1153_v4 }
  0x94   : > { %722 = vmatpush1.bf16.msra.mxu0 %v1155_v5 }
  0x95   : > { %763 = vmatpush1.bf16.msra.mxu1 %v1156_v6  ;;  %723 = vmatprep.subr.bf16.mxu0 %v1157_v7 }
  0x96   : > { %764 = vmatprep.subr.bf16.mxu1 %v1159_v8 }
  0x98   : > { %724 = vmatpush1.bf16.msra.mxu0 %v1161_v9 }
  0x99   : > { %765 = vmatpush1.bf16.msra.mxu1 %v1162_v10 }
  0x9b   : > { %726 = vmatmul.mubr.bf16.vlgmr.msra.gmra.mrb[0].mxu0 %v922_v11 }
  0x9c   : > { %767 = vmatmul.mubr.bf16.vlgmr.msra.gmra.mrb[0].mxu1 %v924_v12 }
 0x16e   : > { %v727_v13 = vpop.f32.mrb[0].mxu0 }
 0x16f   : > { %v768_v15 = vpop.f32.mrb[0].mxu1  ;;  %v729_v17 = vpop.f32.mrb[1].mxu0  ;;  %782 = sbr.rel (%p990_p13) target bundleno = 382 (0x17e), region = 48 }
 0x170   : > { %v769_v16 = vadd.f32 %v768_v15, %v727_v13  ;;  %v770_v19 = vpop.f32.mrb[1].mxu1  ;;  %v731_v21 = vpop.f32.mrb[2].mxu0 }
 0x171   : > { %v771_v20 = vadd.f32 %v770_v19, %v729_v17  ;;  %v772_v22 = vpop.f32.mrb[2].mxu1  ;;  %v732_v24 = vpop.f32.mrb[3].mxu0 }
 0x172   : > { %v775_v23 = vadd.f32 %v769_v16, %v291_v14  ;;  %v773_v25 = vpop.f32.mrb[3].mxu1 }
 0x173   : > { %v776_v26 = vadd.f32 %v771_v20, %v292_v18 }
 0x174   : > { %777 = vst [vmem:[#allocation2] sm:$0xff] %v775_v23 }
 0x175   : > { %778 = vst [vmem:[#allocation2 + $0x8] sm:$0xff] %v776_v26 }
 0x17b   : > { %v783_v27 = vld [vmem:[#allocation2] sm:$0xff] }
 0x17c   : > { %v784_v28 = vld [vmem:[#allocation2 + $0x8] sm:$0xff]  ;;  %785 = vst [vmem:[#allocation8] sm:$0xff] %v783_v27 }
 0x17d   : > { %786 = vst [vmem:[#allocation8 + $0x8] sm:$0xff] %v784_v28 }
 0x17e PF: > { %p1568_p6 = scmp.eq.s32.totalorder %s907_s18, 1  ;;  %s1317_s12 = smov [#allocation8]  }
 0x17f   : > { %s799_s30 = sshll.u32 %s1317_s12, 4  ;;  %s800_s30 = int_to_ptr.vmem [resolvable:$true] %s799_s30 }
 0x180   : > { %s1227_s26 = scalar_lea.vmem %s800_s30, 256  ;;  %p1234_p1 = scmp.lt.s32.totalorder %s800_s30, %s800_s30 }
 0x181   : > { %p1228_p8 = scmp.ne.s32.totalorder %s800_s30, %s1227_s26  ;;  %p1235_p5 = scmp.lt.s32.totalorder %s1227_s26, %s1227_s26 }
 0x183   : > { %p1229_p3 = pnand %p1228_p8, %p1568_p6  ;;  %p1236_p10 = por %p1235_p5, %p1234_p1 }
 0x185   : > { %p1230_p4 = pneg %p1229_p3 }
 0x187   : > { %p1237_p11 = pnand %p1236_p10, %p1230_p4 }
 0x189   : > { %1240 = shalt.err (!%p1237_p11)
}
 0x18a   : > { %s1241_s18 = scalar_lea.hbm %s1615_s3, 256 }
 0x18b   : > { %p1242_p12 = scmp.ne.s32.totalorder %s1615_s3, %s1241_s18  ;;  %p1247_p7 = scmp.lt.u32.totalorder %s1241_s18, %s1615_s3 }
 0x18d   : > { %p1243_p0 = pnand %p1242_p12, %p1568_p6 }
 0x18f   : > { %p1244_p2 = pneg %p1243_p0 }
 0x191   : > { %p1249_p9 = pnand %p1247_p7, %p1244_p2 }
 0x193   : > { %1252 = shalt.err (!%p1249_p9)
}
 0x194   : > { %1003 = dma.vmem_to_hbm [thread:$0]  (%p1568_p6), %s800_s30, 256, %s1615_s3, [#allocation5]  }
 0x195   : > { %1286 = dma.done.wait (%p1568_p6), [#allocation5], 256  }
 0x196   : > { %1288 = vsyncadd (%p1568_p6), [#allocation5], 4294967040 }
 0x197 PF: > { %s20_s17 = sadd.s32 1, %s1311_s17   ;;  %s1625_s12 = smov %s1295_s13 }
 0x198   : > { %p17_p13 = scmp.ge.s32.totalorder %s20_s17, 4   ;;  %s1626_s13 = smov %s1299_s14 }
 0x199   : > { %s1627_s14 = smov %s1389_s24  ;;  %s1628_s15 = smov %s1307_s16 }
 0x19a   : > { %s1629_s16 = smov %s1631_s19  ;;  %19 = sbr.rel (!%p17_p13) target bundleno = 7 (0x7), region = 94 }
 0x1a1   :  { %812 = vsyncpa [#allocation4], 1 }
 0x1a2   :  { %814 = vsyncpa [#allocation4 + $0x1], 1 }
 0x1a3   :  { %815 = vsyncpa [#allocation7], 1 }
 0x1a4   :  { %817 = vsyncpa [#allocation7 + $0x1], 1 }
 0x1a5   :  { %818 = vsyncpa [#allocation5], 1 }
 0x1a6   :  { %820 = vsyncpa [#allocation5 + $0x1], 1 }

</bundles_post_ra>
